<compile_context>
chip_gen: v5e
topology: v5e:2x2
jax: 0.10.0
libtpu: 0.0.40
codegen_flags: <defaults>
</compile_context>

<pallas_src>
import functools

import jax
import jax.numpy as jnp
from jax.experimental import pallas as pl
from jax.experimental.pallas import tpu as pltpu


def _convlstm_kernel(comb_ref, w_ref, c_ref, h_out_ref, c_out_ref,
                     *, hid, k, W, HW, pad):
    """One batch image per grid step.

    comb_ref : (1, C1, L)    bf16  channel-major concat(x, h, ones); H padded
                                   by `pad` zero rows top/bottom, W unpadded,
                                   flattened with `pad` guard zeros each end.
    w_ref    : (k*k, G, C1)  bf16  fused gate weights, rows = [i|f|c~|o];
                                   i/f/o rows pre-scaled by 0.5; bias folded
                                   into the ones-channel column of the centre
                                   tap.
    c_ref    : (1, hid, HW)  f32   previous cell state.
    h_out_ref, c_out_ref : (1, hid, HW) f32.
    """
    G = 4 * hid

    # Column index (x = m mod W) of each output pixel; masks taps that would
    # read across a row boundary (W is not zero-padded in the flat buffer).
    col = jax.lax.broadcasted_iota(jnp.int32, (1, HW), 1) % W

    acc = jnp.zeros((G, HW), jnp.float32)
    for kh in range(k):
        for kw in range(k):
            dw = kw - pad
            start = pad + kh * W + dw                    # static, >= 0
            sl = comb_ref[0, :, start:start + HW]        # (C1, HW) bf16
            if dw != 0:
                valid = jnp.logical_and(col + dw >= 0, col + dw < W)
                sl = jnp.where(valid, sl, jnp.zeros_like(sl))
            acc = acc + jnp.dot(w_ref[kh * k + kw], sl,
                                preferred_element_type=jnp.float32)

    # i/f/o rows were pre-scaled by 0.5 (weights + bias), so
    # sigmoid(z) = 0.5*tanh(0.5 z) + 0.5 becomes 0.5*tanh(acc) + 0.5;
    # the c~ rows are unscaled -> plain tanh(acc).  One EUP pass total.
    row = jax.lax.broadcasted_iota(jnp.int32, acc.shape, 0)
    is_ctilde = jnp.logical_and(row >= 2 * hid, row < 3 * hid)
    t = jnp.tanh(acc)
    act = jnp.where(is_ctilde, t, 0.5 * t + 0.5)

    i_g = act[0 * hid:1 * hid, :]                        # aligned sublane slices
    f_g = act[1 * hid:2 * hid, :]
    c_t = act[2 * hid:3 * hid, :]
    o_g = act[3 * hid:4 * hid, :]

    c_prev = c_ref[0]
    c_new = f_g * c_prev + i_g * c_t
    h_new = o_g * jnp.tanh(c_new)

    c_out_ref[0] = c_new.astype(c_out_ref.dtype)
    h_out_ref[0] = h_new.astype(h_out_ref.dtype)


def fuse_gate_params(w_i, w_f, w_c, w_o, b_i, b_f, b_c, b_o, *, kernel_size,
                     compute_dtype=jnp.bfloat16):
    """PyTorch Conv2d params (hid, C, k, k)/(hid,) -> fused (k*k, 4*hid, C+1).

    Amortized (per-parameter-set) host-side prep:
      * gate row order [i | f | c~ | o],
      * i/f/o rows and biases pre-scaled by 0.5 (sigmoid-via-tanh),
      * biases folded into the extra 'ones' input channel of the centre tap.
    """
    k = kernel_size
    hid = w_i.shape[0]
    p = k // 2
    w = jnp.concatenate([w_i, w_f, w_c, w_o], axis=0).astype(jnp.float32)
    b = jnp.concatenate([b_i, b_f, b_c, b_o], axis=0).astype(jnp.float32)
    scale = jnp.concatenate([jnp.full((hid,), 0.5, jnp.float32),
                             jnp.full((hid,), 0.5, jnp.float32),
                             jnp.ones((hid,), jnp.float32),
                             jnp.full((hid,), 0.5, jnp.float32)])
    w = w * scale[:, None, None, None]
    b = b * scale
    # (4h, C, k, k) -> (k, k, 4h, C) -> (k*k, 4h, C)
    w = jnp.transpose(w, (2, 3, 0, 1)).reshape(k * k, 4 * hid, -1)
    ones_col = jnp.zeros((k * k, 4 * hid, 1), jnp.float32)
    ones_col = ones_col.at[p * k + p, :, 0].set(b)
    return jnp.concatenate([w, ones_col], axis=-1).astype(compute_dtype)


def conv_lstm_cell(x, h, c, w_fused, *, kernel_size,
                   compute_dtype=jnp.bfloat16):
    """x: (N, Cin, H, W), h/c: (N, hid, H, W) (NCHW).  Returns (h_new, c_new)."""
    N, Cin, H, W = x.shape
    hid = h.shape[1]
    k = kernel_size
    p = k // 2
    C1 = Cin + hid + 1                 # + constant-one channel (bias fold)
    HW = H * W
    Hp = H + 2 * p
    L = Hp * W + 2 * p                 # flat length: H padded, + guard zeros

    # ---- cheap glue: no transpose, no im2col, one bf16 cast ---------------
    ones_ch = jnp.ones((N, 1, H, W), x.dtype)
    comb = jnp.concatenate([x, h.astype(x.dtype), ones_ch], axis=1)
    comb = jnp.pad(comb, ((0, 0), (0, 0), (p, p), (0, 0)))    # pad H only
    comb = comb.reshape(N, C1, Hp * W)
    comb = jnp.pad(comb, ((0, 0), (0, 0), (p, p)))            # flat guards
    comb = comb.astype(compute_dtype)

    c_flat = c.reshape(N, hid, HW).astype(jnp.float32)

    kernel = functools.partial(_convlstm_kernel,
                               hid=hid, k=k, W=W, HW=HW, pad=p)

    # Explicit scoped-VMEM request sized from the double-buffered blocks,
    # clamped to be safe on v5e (16 MiB default) and v7x (64 MiB physical).
    step_bytes = 2 * (C1 * L * 2                       # comb block (bf16)
                      + k * k * 4 * hid * C1 * 2       # weights (bf16)
                      + hid * HW * 4                   # c block (f32)
                      + 2 * hid * HW * 4)              # h/c out blocks (f32)
    vmem_limit = int(min(48 << 20, max(24 << 20, 4 * step_bytes)))

    h_out, c_out = pl.pallas_call(
        kernel,
        out_shape=(jax.ShapeDtypeStruct((N, hid, HW), jnp.float32),
                   jax.ShapeDtypeStruct((N, hid, HW), jnp.float32)),
        grid_spec=pltpu.PrefetchScalarGridSpec(
            num_scalar_prefetch=0,
            grid=(N,),
            in_specs=[
                pl.BlockSpec((1, C1, L), lambda n: (n, 0, 0)),
                pl.BlockSpec((k * k, 4 * hid, C1), lambda n: (0, 0, 0)),
                pl.BlockSpec((1, hid, HW), lambda n: (n, 0, 0)),
            ],
            out_specs=[
                pl.BlockSpec((1, hid, HW), lambda n: (n, 0, 0)),
                pl.BlockSpec((1, hid, HW), lambda n: (n, 0, 0)),
            ],
        ),
        compiler_params=pltpu.CompilerParams(
            dimension_semantics=("parallel",),
            vmem_limit_bytes=vmem_limit),
    )(comb, w_fused, c_flat)

    h_new = h_out.reshape(N, hid, H, W).astype(x.dtype)
    c_new = c_out.reshape(N, hid, H, W).astype(x.dtype)
    return h_new, c_new


def _reference_forward(x, h, c, ws, bs):
    """Pure-JAX reference mirroring the PyTorch module (NCHW convs, f32)."""
    comb = jnp.concatenate([x, h], axis=1)

    def conv(w, b):
        y = jax.lax.conv_general_dilated(
            comb, w, window_strides=(1, 1), padding="SAME",
            dimension_numbers=("NCHW", "OIHW", "NCHW"))
        return y + b[None, :, None, None]

    i = jax.nn.sigmoid(conv(ws[0], bs[0]))
    f = jax.nn.sigmoid(conv(ws[1], bs[1]))
    c_tilde = jnp.tanh(conv(ws[2], bs[2]))
    o = jax.nn.sigmoid(conv(ws[3], bs[3]))
    c_new = f * c + i * c_tilde
    h_new = o * jnp.tanh(c_new)
    return h_new, c_new


if __name__ == "__main__":
    # Small shapes consistent with the module: ConvLSTMCell(4, 8, 3) on 16x16.
    N, Cin, hid, H, W, k = 2, 4, 8, 16, 16, 3
    C = Cin + hid

    key = jax.random.PRNGKey(0)
    keys = jax.random.split(key, 12)

    x = jax.random.normal(keys[0], (N, Cin, H, W), jnp.float32)
    h0 = jax.random.normal(keys[1], (N, hid, H, W), jnp.float32)
    c0 = jax.random.normal(keys[2], (N, hid, H, W), jnp.float32)

    # Deterministic synthetic conv parameters (PyTorch Conv2d shapes).
    bound = 1.0 / (C * k * k) ** 0.5
    gate_ws = [jax.random.uniform(keys[3 + g], (hid, C, k, k), jnp.float32,
                                  -bound, bound) for g in range(4)]
    gate_bs = [jax.random.uniform(keys[7 + g], (hid,), jnp.float32,
                                  -bound, bound) for g in range(4)]

    w_fused = fuse_gate_params(*gate_ws, *gate_bs, kernel_size=k)

    fwd = jax.jit(functools.partial(conv_lstm_cell, kernel_size=k))
    h_new, c_new = fwd(x, h0, c0, w_fused)
    jax.block_until_ready((h_new, c_new))

    h_ref, c_ref = _reference_forward(x, h0, c0, gate_ws, gate_bs)
    assert h_new.shape == (N, hid, H, W) and c_new.shape == (N, hid, H, W)
    # bf16 matmul inputs (f32 accumulation): tolerance covers bf16 rounding of
    # the gate pre-activations; all gate / state math is f32.
    assert jnp.allclose(h_new, h_ref, rtol=2e-2, atol=2e-2), \
        float(jnp.max(jnp.abs(h_new - h_ref)))
    assert jnp.allclose(c_new, c_ref, rtol=2e-2, atol=2e-2), \
        float(jnp.max(jnp.abs(c_new - c_ref)))

    print("KERNEL_OK")
</pallas_src>

<mosaic_0001>
module attributes {stable_mosaic.version = 11 : i64} {
  func.func @_convlstm_kernel(%arg0: i32, %arg1: memref<1x13x290xbf16, #tpu.memory_space<vmem>>, %arg2: memref<9x32x13xbf16, #tpu.memory_space<vmem>>, %arg3: memref<1x8x256xf32, #tpu.memory_space<vmem>>, %arg4: memref<1x8x256xf32, #tpu.memory_space<vmem>>, %arg5: memref<1x8x256xf32, #tpu.memory_space<vmem>>) attributes {dimension_semantics = [#tpu.dimension_semantics<parallel>], iteration_bounds = array<i64: 2>, scalar_prefetch = 0 : i64, scratch_operands = 0 : i64, tpu.core_type = #tpu.core_type<tc>, window_params = [{transform_indices = @transform_0, window_bounds = array<i64: 1, 13, 290>}, {pipeline_mode = #tpu.pipeline_mode<synchronous>, transform_indices = @transform_1, window_bounds = array<i64: 9, 32, 13>}, {transform_indices = @transform_2, window_bounds = array<i64: 1, 8, 256>}, {transform_indices = @transform_3, window_bounds = array<i64: 1, 8, 256>}, {transform_indices = @transform_4, window_bounds = array<i64: 1, 8, 256>}]} {
    %0 = tpu.iota {dimensions = array<i32: 1>} : vector<1x256xi32>
    %c16_i32 = arith.constant 16 : i32
    %c0_i32 = arith.constant 0 : i32
    %1 = arith.cmpi eq, %c16_i32, %c0_i32 : i32
    %c1_i32 = arith.constant 1 : i32
    %2 = arith.select %1, %c1_i32, %c16_i32 : i32
    %3 = vector.broadcast %2 : i32 to vector<1x256xi32>
    %4 = arith.remsi %0, %3 : vector<1x256xi32>
    %c0_i32_0 = arith.constant 0 : i32
    %5 = vector.broadcast %c0_i32_0 : i32 to vector<1x256xi32>
    %6 = arith.cmpi ne, %4, %5 : vector<1x256xi32>
    %c0_i32_1 = arith.constant 0 : i32
    %7 = vector.broadcast %c0_i32_1 : i32 to vector<1x256xi32>
    %8 = arith.cmpi slt, %4, %7 : vector<1x256xi32>
    %c0_i32_2 = arith.constant 0 : i32
    %9 = arith.cmpi slt, %2, %c0_i32_2 : i32
    %10 = vector.broadcast %9 : i1 to vector<1x256xi1>
    %11 = vector.broadcast %10 : vector<1x256xi1> to vector<1x256xi1>
    %12 = arith.xori %8, %11 : vector<1x256xi1>
    %13 = arith.andi %12, %6 : vector<1x256xi1>
    %14 = vector.broadcast %2 : i32 to vector<1x256xi32>
    %15 = arith.addi %4, %14 : vector<1x256xi32>
    %16 = arith.select %13, %15, %4 : vector<1x256xi1>, vector<1x256xi32>
    %cst = arith.constant 0.000000e+00 : f32
    %17 = vector.broadcast %cst : f32 to vector<32x256xf32>
    %c0 = arith.constant 0 : index
    %c0_3 = arith.constant 0 : index
    %c0_4 = arith.constant 0 : index
    %18 = vector.load %arg1[%c0, %c0_3, %c0_4] : memref<1x13x290xbf16, #tpu.memory_space<vmem>>, vector<1x13x256xbf16>
    %19 = vector.shape_cast %18 : vector<1x13x256xbf16> to vector<13x256xbf16>
    %c-1_i32 = arith.constant -1 : i32
    %20 = vector.broadcast %c-1_i32 : i32 to vector<1x256xi32>
    %21 = arith.addi %16, %20 : vector<1x256xi32>
    %c0_i32_5 = arith.constant 0 : i32
    %22 = vector.broadcast %c0_i32_5 : i32 to vector<1x256xi32>
    %23 = arith.cmpi sge, %21, %22 : vector<1x256xi32>
    %c-1_i32_6 = arith.constant -1 : i32
    %24 = vector.broadcast %c-1_i32_6 : i32 to vector<1x256xi32>
    %25 = arith.addi %16, %24 : vector<1x256xi32>
    %c16_i32_7 = arith.constant 16 : i32
    %26 = vector.broadcast %c16_i32_7 : i32 to vector<1x256xi32>
    %27 = arith.cmpi slt, %25, %26 : vector<1x256xi32>
    %28 = arith.andi %23, %27 : vector<1x256xi1>
    %cst_8 = arith.constant 0.000000e+00 : bf16
    %29 = vector.broadcast %cst_8 : bf16 to vector<13x256xbf16>
    %30 = vector.shape_cast %28 : vector<1x256xi1> to vector<1x256xi1>
    %31 = vector.broadcast %30 : vector<1x256xi1> to vector<13x256xi1>
    %32 = arith.select %31, %19, %29 : vector<13x256xi1>, vector<13x256xbf16>
    %c0_9 = arith.constant 0 : index
    %c0_10 = arith.constant 0 : index
    %c0_11 = arith.constant 0 : index
    %33 = vector.load %arg2[%c0_9, %c0_10, %c0_11] : memref<9x32x13xbf16, #tpu.memory_space<vmem>>, vector<1x32x13xbf16>
    %34 = vector.shape_cast %33 : vector<1x32x13xbf16> to vector<32x13xbf16>
    %cst_12 = arith.constant dense<0.000000e+00> : vector<32x256xf32>
    %35 = tpu.matmul %34, %32, %cst_12 {dimension_numbers = #tpu.dot_dimension_numbers<[1], [0], [0], [1], [0, 0, 1, 1], [], []>} : vector<32x13xbf16>, vector<13x256xbf16>, vector<32x256xf32> -> vector<32x256xf32>
    %36 = arith.addf %17, %35 : vector<32x256xf32>
    %c0_13 = arith.constant 0 : index
    %c0_14 = arith.constant 0 : index
    %c1 = arith.constant 1 : index
    %37 = vector.load %arg1[%c0_13, %c0_14, %c1] : memref<1x13x290xbf16, #tpu.memory_space<vmem>>, vector<1x13x256xbf16>
    %38 = vector.shape_cast %37 : vector<1x13x256xbf16> to vector<13x256xbf16>
    %c1_15 = arith.constant 1 : index
    %c0_16 = arith.constant 0 : index
    %c0_17 = arith.constant 0 : index
    %39 = vector.load %arg2[%c1_15, %c0_16, %c0_17] : memref<9x32x13xbf16, #tpu.memory_space<vmem>>, vector<1x32x13xbf16>
    %40 = vector.shape_cast %39 : vector<1x32x13xbf16> to vector<32x13xbf16>
    %cst_18 = arith.constant dense<0.000000e+00> : vector<32x256xf32>
    %41 = tpu.matmul %40, %38, %cst_18 {dimension_numbers = #tpu.dot_dimension_numbers<[1], [0], [0], [1], [0, 0, 1, 1], [], []>} : vector<32x13xbf16>, vector<13x256xbf16>, vector<32x256xf32> -> vector<32x256xf32>
    %42 = arith.addf %36, %41 : vector<32x256xf32>
    %c0_19 = arith.constant 0 : index
    %c0_20 = arith.constant 0 : index
    %c2 = arith.constant 2 : index
    %43 = vector.load %arg1[%c0_19, %c0_20, %c2] : memref<1x13x290xbf16, #tpu.memory_space<vmem>>, vector<1x13x256xbf16>
    %44 = vector.shape_cast %43 : vector<1x13x256xbf16> to vector<13x256xbf16>
    %c1_i32_21 = arith.constant 1 : i32
    %45 = vector.broadcast %c1_i32_21 : i32 to vector<1x256xi32>
    %46 = arith.addi %16, %45 : vector<1x256xi32>
    %c0_i32_22 = arith.constant 0 : i32
    %47 = vector.broadcast %c0_i32_22 : i32 to vector<1x256xi32>
    %48 = arith.cmpi sge, %46, %47 : vector<1x256xi32>
    %c1_i32_23 = arith.constant 1 : i32
    %49 = vector.broadcast %c1_i32_23 : i32 to vector<1x256xi32>
    %50 = arith.addi %16, %49 : vector<1x256xi32>
    %c16_i32_24 = arith.constant 16 : i32
    %51 = vector.broadcast %c16_i32_24 : i32 to vector<1x256xi32>
    %52 = arith.cmpi slt, %50, %51 : vector<1x256xi32>
    %53 = arith.andi %48, %52 : vector<1x256xi1>
    %cst_25 = arith.constant 0.000000e+00 : bf16
    %54 = vector.broadcast %cst_25 : bf16 to vector<13x256xbf16>
    %55 = vector.shape_cast %53 : vector<1x256xi1> to vector<1x256xi1>
    %56 = vector.broadcast %55 : vector<1x256xi1> to vector<13x256xi1>
    %57 = arith.select %56, %44, %54 : vector<13x256xi1>, vector<13x256xbf16>
    %c2_26 = arith.constant 2 : index
    %c0_27 = arith.constant 0 : index
    %c0_28 = arith.constant 0 : index
    %58 = vector.load %arg2[%c2_26, %c0_27, %c0_28] : memref<9x32x13xbf16, #tpu.memory_space<vmem>>, vector<1x32x13xbf16>
    %59 = vector.shape_cast %58 : vector<1x32x13xbf16> to vector<32x13xbf16>
    %cst_29 = arith.constant dense<0.000000e+00> : vector<32x256xf32>
    %60 = tpu.matmul %59, %57, %cst_29 {dimension_numbers = #tpu.dot_dimension_numbers<[1], [0], [0], [1], [0, 0, 1, 1], [], []>} : vector<32x13xbf16>, vector<13x256xbf16>, vector<32x256xf32> -> vector<32x256xf32>
    %61 = arith.addf %42, %60 : vector<32x256xf32>
    %c0_30 = arith.constant 0 : index
    %c0_31 = arith.constant 0 : index
    %c16 = arith.constant 16 : index
    %62 = vector.load %arg1[%c0_30, %c0_31, %c16] : memref<1x13x290xbf16, #tpu.memory_space<vmem>>, vector<1x13x256xbf16>
    %63 = vector.shape_cast %62 : vector<1x13x256xbf16> to vector<13x256xbf16>
    %c-1_i32_32 = arith.constant -1 : i32
    %64 = vector.broadcast %c-1_i32_32 : i32 to vector<1x256xi32>
    %65 = arith.addi %16, %64 : vector<1x256xi32>
    %c0_i32_33 = arith.constant 0 : i32
    %66 = vector.broadcast %c0_i32_33 : i32 to vector<1x256xi32>
    %67 = arith.cmpi sge, %65, %66 : vector<1x256xi32>
    %c-1_i32_34 = arith.constant -1 : i32
    %68 = vector.broadcast %c-1_i32_34 : i32 to vector<1x256xi32>
    %69 = arith.addi %16, %68 : vector<1x256xi32>
    %c16_i32_35 = arith.constant 16 : i32
    %70 = vector.broadcast %c16_i32_35 : i32 to vector<1x256xi32>
    %71 = arith.cmpi slt, %69, %70 : vector<1x256xi32>
    %72 = arith.andi %67, %71 : vector<1x256xi1>
    %cst_36 = arith.constant 0.000000e+00 : bf16
    %73 = vector.broadcast %cst_36 : bf16 to vector<13x256xbf16>
    %74 = vector.shape_cast %72 : vector<1x256xi1> to vector<1x256xi1>
    %75 = vector.broadcast %74 : vector<1x256xi1> to vector<13x256xi1>
    %76 = arith.select %75, %63, %73 : vector<13x256xi1>, vector<13x256xbf16>
    %c3 = arith.constant 3 : index
    %c0_37 = arith.constant 0 : index
    %c0_38 = arith.constant 0 : index
    %77 = vector.load %arg2[%c3, %c0_37, %c0_38] : memref<9x32x13xbf16, #tpu.memory_space<vmem>>, vector<1x32x13xbf16>
    %78 = vector.shape_cast %77 : vector<1x32x13xbf16> to vector<32x13xbf16>
    %cst_39 = arith.constant dense<0.000000e+00> : vector<32x256xf32>
    %79 = tpu.matmul %78, %76, %cst_39 {dimension_numbers = #tpu.dot_dimension_numbers<[1], [0], [0], [1], [0, 0, 1, 1], [], []>} : vector<32x13xbf16>, vector<13x256xbf16>, vector<32x256xf32> -> vector<32x256xf32>
    %80 = arith.addf %61, %79 : vector<32x256xf32>
    %c0_40 = arith.constant 0 : index
    %c0_41 = arith.constant 0 : index
    %c17 = arith.constant 17 : index
    %81 = vector.load %arg1[%c0_40, %c0_41, %c17] : memref<1x13x290xbf16, #tpu.memory_space<vmem>>, vector<1x13x256xbf16>
    %82 = vector.shape_cast %81 : vector<1x13x256xbf16> to vector<13x256xbf16>
    %c4 = arith.constant 4 : index
    %c0_42 = arith.constant 0 : index
    %c0_43 = arith.constant 0 : index
    %83 = vector.load %arg2[%c4, %c0_42, %c0_43] : memref<9x32x13xbf16, #tpu.memory_space<vmem>>, vector<1x32x13xbf16>
    %84 = vector.shape_cast %83 : vector<1x32x13xbf16> to vector<32x13xbf16>
    %cst_44 = arith.constant dense<0.000000e+00> : vector<32x256xf32>
    %85 = tpu.matmul %84, %82, %cst_44 {dimension_numbers = #tpu.dot_dimension_numbers<[1], [0], [0], [1], [0, 0, 1, 1], [], []>} : vector<32x13xbf16>, vector<13x256xbf16>, vector<32x256xf32> -> vector<32x256xf32>
    %86 = arith.addf %80, %85 : vector<32x256xf32>
    %c0_45 = arith.constant 0 : index
    %c0_46 = arith.constant 0 : index
    %c18 = arith.constant 18 : index
    %87 = vector.load %arg1[%c0_45, %c0_46, %c18] : memref<1x13x290xbf16, #tpu.memory_space<vmem>>, vector<1x13x256xbf16>
    %88 = vector.shape_cast %87 : vector<1x13x256xbf16> to vector<13x256xbf16>
    %c1_i32_47 = arith.constant 1 : i32
    %89 = vector.broadcast %c1_i32_47 : i32 to vector<1x256xi32>
    %90 = arith.addi %16, %89 : vector<1x256xi32>
    %c0_i32_48 = arith.constant 0 : i32
    %91 = vector.broadcast %c0_i32_48 : i32 to vector<1x256xi32>
    %92 = arith.cmpi sge, %90, %91 : vector<1x256xi32>
    %c1_i32_49 = arith.constant 1 : i32
    %93 = vector.broadcast %c1_i32_49 : i32 to vector<1x256xi32>
    %94 = arith.addi %16, %93 : vector<1x256xi32>
    %c16_i32_50 = arith.constant 16 : i32
    %95 = vector.broadcast %c16_i32_50 : i32 to vector<1x256xi32>
    %96 = arith.cmpi slt, %94, %95 : vector<1x256xi32>
    %97 = arith.andi %92, %96 : vector<1x256xi1>
    %cst_51 = arith.constant 0.000000e+00 : bf16
    %98 = vector.broadcast %cst_51 : bf16 to vector<13x256xbf16>
    %99 = vector.shape_cast %97 : vector<1x256xi1> to vector<1x256xi1>
    %100 = vector.broadcast %99 : vector<1x256xi1> to vector<13x256xi1>
    %101 = arith.select %100, %88, %98 : vector<13x256xi1>, vector<13x256xbf16>
    %c5 = arith.constant 5 : index
    %c0_52 = arith.constant 0 : index
    %c0_53 = arith.constant 0 : index
    %102 = vector.load %arg2[%c5, %c0_52, %c0_53] : memref<9x32x13xbf16, #tpu.memory_space<vmem>>, vector<1x32x13xbf16>
    %103 = vector.shape_cast %102 : vector<1x32x13xbf16> to vector<32x13xbf16>
    %cst_54 = arith.constant dense<0.000000e+00> : vector<32x256xf32>
    %104 = tpu.matmul %103, %101, %cst_54 {dimension_numbers = #tpu.dot_dimension_numbers<[1], [0], [0], [1], [0, 0, 1, 1], [], []>} : vector<32x13xbf16>, vector<13x256xbf16>, vector<32x256xf32> -> vector<32x256xf32>
    %105 = arith.addf %86, %104 : vector<32x256xf32>
    %c0_55 = arith.constant 0 : index
    %c0_56 = arith.constant 0 : index
    %c32 = arith.constant 32 : index
    %106 = vector.load %arg1[%c0_55, %c0_56, %c32] : memref<1x13x290xbf16, #tpu.memory_space<vmem>>, vector<1x13x256xbf16>
    %107 = vector.shape_cast %106 : vector<1x13x256xbf16> to vector<13x256xbf16>
    %c-1_i32_57 = arith.constant -1 : i32
    %108 = vector.broadcast %c-1_i32_57 : i32 to vector<1x256xi32>
    %109 = arith.addi %16, %108 : vector<1x256xi32>
    %c0_i32_58 = arith.constant 0 : i32
    %110 = vector.broadcast %c0_i32_58 : i32 to vector<1x256xi32>
    %111 = arith.cmpi sge, %109, %110 : vector<1x256xi32>
    %c-1_i32_59 = arith.constant -1 : i32
    %112 = vector.broadcast %c-1_i32_59 : i32 to vector<1x256xi32>
    %113 = arith.addi %16, %112 : vector<1x256xi32>
    %c16_i32_60 = arith.constant 16 : i32
    %114 = vector.broadcast %c16_i32_60 : i32 to vector<1x256xi32>
    %115 = arith.cmpi slt, %113, %114 : vector<1x256xi32>
    %116 = arith.andi %111, %115 : vector<1x256xi1>
    %cst_61 = arith.constant 0.000000e+00 : bf16
    %117 = vector.broadcast %cst_61 : bf16 to vector<13x256xbf16>
    %118 = vector.shape_cast %116 : vector<1x256xi1> to vector<1x256xi1>
    %119 = vector.broadcast %118 : vector<1x256xi1> to vector<13x256xi1>
    %120 = arith.select %119, %107, %117 : vector<13x256xi1>, vector<13x256xbf16>
    %c6 = arith.constant 6 : index
    %c0_62 = arith.constant 0 : index
    %c0_63 = arith.constant 0 : index
    %121 = vector.load %arg2[%c6, %c0_62, %c0_63] : memref<9x32x13xbf16, #tpu.memory_space<vmem>>, vector<1x32x13xbf16>
    %122 = vector.shape_cast %121 : vector<1x32x13xbf16> to vector<32x13xbf16>
    %cst_64 = arith.constant dense<0.000000e+00> : vector<32x256xf32>
    %123 = tpu.matmul %122, %120, %cst_64 {dimension_numbers = #tpu.dot_dimension_numbers<[1], [0], [0], [1], [0, 0, 1, 1], [], []>} : vector<32x13xbf16>, vector<13x256xbf16>, vector<32x256xf32> -> vector<32x256xf32>
    %124 = arith.addf %105, %123 : vector<32x256xf32>
    %c0_65 = arith.constant 0 : index
    %c0_66 = arith.constant 0 : index
    %c33 = arith.constant 33 : index
    %125 = vector.load %arg1[%c0_65, %c0_66, %c33] : memref<1x13x290xbf16, #tpu.memory_space<vmem>>, vector<1x13x256xbf16>
    %126 = vector.shape_cast %125 : vector<1x13x256xbf16> to vector<13x256xbf16>
    %c7 = arith.constant 7 : index
    %c0_67 = arith.constant 0 : index
    %c0_68 = arith.constant 0 : index
    %127 = vector.load %arg2[%c7, %c0_67, %c0_68] : memref<9x32x13xbf16, #tpu.memory_space<vmem>>, vector<1x32x13xbf16>
    %128 = vector.shape_cast %127 : vector<1x32x13xbf16> to vector<32x13xbf16>
    %cst_69 = arith.constant dense<0.000000e+00> : vector<32x256xf32>
    %129 = tpu.matmul %128, %126, %cst_69 {dimension_numbers = #tpu.dot_dimension_numbers<[1], [0], [0], [1], [0, 0, 1, 1], [], []>} : vector<32x13xbf16>, vector<13x256xbf16>, vector<32x256xf32> -> vector<32x256xf32>
    %130 = arith.addf %124, %129 : vector<32x256xf32>
    %c0_70 = arith.constant 0 : index
    %c0_71 = arith.constant 0 : index
    %c34 = arith.constant 34 : index
    %131 = vector.load %arg1[%c0_70, %c0_71, %c34] : memref<1x13x290xbf16, #tpu.memory_space<vmem>>, vector<1x13x256xbf16>
    %132 = vector.shape_cast %131 : vector<1x13x256xbf16> to vector<13x256xbf16>
    %c1_i32_72 = arith.constant 1 : i32
    %133 = vector.broadcast %c1_i32_72 : i32 to vector<1x256xi32>
    %134 = arith.addi %16, %133 : vector<1x256xi32>
    %c0_i32_73 = arith.constant 0 : i32
    %135 = vector.broadcast %c0_i32_73 : i32 to vector<1x256xi32>
    %136 = arith.cmpi sge, %134, %135 : vector<1x256xi32>
    %c1_i32_74 = arith.constant 1 : i32
    %137 = vector.broadcast %c1_i32_74 : i32 to vector<1x256xi32>
    %138 = arith.addi %16, %137 : vector<1x256xi32>
    %c16_i32_75 = arith.constant 16 : i32
    %139 = vector.broadcast %c16_i32_75 : i32 to vector<1x256xi32>
    %140 = arith.cmpi slt, %138, %139 : vector<1x256xi32>
    %141 = arith.andi %136, %140 : vector<1x256xi1>
    %cst_76 = arith.constant 0.000000e+00 : bf16
    %142 = vector.broadcast %cst_76 : bf16 to vector<13x256xbf16>
    %143 = vector.shape_cast %141 : vector<1x256xi1> to vector<1x256xi1>
    %144 = vector.broadcast %143 : vector<1x256xi1> to vector<13x256xi1>
    %145 = arith.select %144, %132, %142 : vector<13x256xi1>, vector<13x256xbf16>
    %c8 = arith.constant 8 : index
    %c0_77 = arith.constant 0 : index
    %c0_78 = arith.constant 0 : index
    %146 = vector.load %arg2[%c8, %c0_77, %c0_78] : memref<9x32x13xbf16, #tpu.memory_space<vmem>>, vector<1x32x13xbf16>
    %147 = vector.shape_cast %146 : vector<1x32x13xbf16> to vector<32x13xbf16>
    %cst_79 = arith.constant dense<0.000000e+00> : vector<32x256xf32>
    %148 = tpu.matmul %147, %145, %cst_79 {dimension_numbers = #tpu.dot_dimension_numbers<[1], [0], [0], [1], [0, 0, 1, 1], [], []>} : vector<32x13xbf16>, vector<13x256xbf16>, vector<32x256xf32> -> vector<32x256xf32>
    %149 = arith.addf %130, %148 : vector<32x256xf32>
    %150 = tpu.iota {dimensions = array<i32: 0>} : vector<32x256xi32>
    %c16_i32_80 = arith.constant 16 : i32
    %151 = vector.broadcast %c16_i32_80 : i32 to vector<32x256xi32>
    %152 = arith.cmpi sge, %150, %151 : vector<32x256xi32>
    %c24_i32 = arith.constant 24 : i32
    %153 = vector.broadcast %c24_i32 : i32 to vector<32x256xi32>
    %154 = arith.cmpi slt, %150, %153 : vector<32x256xi32>
    %155 = arith.andi %152, %154 : vector<32x256xi1>
    %156 = math.tanh %149 : vector<32x256xf32>
    %cst_81 = arith.constant 5.000000e-01 : f32
    %157 = vector.broadcast %cst_81 : f32 to vector<32x256xf32>
    %158 = arith.mulf %157, %156 : vector<32x256xf32>
    %cst_82 = arith.constant 5.000000e-01 : f32
    %159 = vector.broadcast %cst_82 : f32 to vector<32x256xf32>
    %160 = arith.addf %158, %159 : vector<32x256xf32>
    %161 = arith.select %155, %156, %160 : vector<32x256xi1>, vector<32x256xf32>
    %162 = vector.extract_strided_slice %161 {offsets = [0, 0], sizes = [8, 256], strides = [1, 1]} : vector<32x256xf32> to vector<8x256xf32>
    %163 = vector.extract_strided_slice %161 {offsets = [8, 0], sizes = [8, 256], strides = [1, 1]} : vector<32x256xf32> to vector<8x256xf32>
    %164 = vector.extract_strided_slice %161 {offsets = [16, 0], sizes = [8, 256], strides = [1, 1]} : vector<32x256xf32> to vector<8x256xf32>
    %165 = vector.extract_strided_slice %161 {offsets = [24, 0], sizes = [8, 256], strides = [1, 1]} : vector<32x256xf32> to vector<8x256xf32>
    %c0_83 = arith.constant 0 : index
    %c0_84 = arith.constant 0 : index
    %c0_85 = arith.constant 0 : index
    %166 = vector.load %arg3[%c0_83, %c0_84, %c0_85] : memref<1x8x256xf32, #tpu.memory_space<vmem>>, vector<1x8x256xf32>
    %167 = vector.shape_cast %166 : vector<1x8x256xf32> to vector<8x256xf32>
    %168 = arith.mulf %163, %167 : vector<8x256xf32>
    %169 = arith.mulf %162, %164 : vector<8x256xf32>
    %170 = arith.addf %168, %169 : vector<8x256xf32>
    %171 = math.tanh %170 : vector<8x256xf32>
    %172 = arith.mulf %165, %171 : vector<8x256xf32>
    %c0_86 = arith.constant 0 : index
    %c0_87 = arith.constant 0 : index
    %c0_88 = arith.constant 0 : index
    %173 = vector.load %arg5[%c0_86, %c0_87, %c0_88] : memref<1x8x256xf32, #tpu.memory_space<vmem>>, vector<1x8x256xf32>
    %174 = vector.shape_cast %173 : vector<1x8x256xf32> to vector<8x256xf32>
    %175 = vector.shape_cast %170 : vector<8x256xf32> to vector<1x8x256xf32>
    tpu.vector_store %arg5[%c0_86, %c0_87, %c0_88], %175 {strides = array<i32>} : memref<1x8x256xf32, #tpu.memory_space<vmem>>, vector<1x8x256xf32>,
    %c0_89 = arith.constant 0 : index
    %c0_90 = arith.constant 0 : index
    %c0_91 = arith.constant 0 : index
    %176 = vector.load %arg4[%c0_89, %c0_90, %c0_91] : memref<1x8x256xf32, #tpu.memory_space<vmem>>, vector<1x8x256xf32>
    %177 = vector.shape_cast %176 : vector<1x8x256xf32> to vector<8x256xf32>
    %178 = vector.shape_cast %172 : vector<8x256xf32> to vector<1x8x256xf32>
    tpu.vector_store %arg4[%c0_89, %c0_90, %c0_91], %178 {strides = array<i32>} : memref<1x8x256xf32, #tpu.memory_space<vmem>>, vector<1x8x256xf32>,
    return
  }
  func.func @transform_0(%arg0: i32) -> (i32, i32, i32) {
    %c0_i32 = arith.constant 0 : i32
    %c0_i32_0 = arith.constant 0 : i32
    %c0_i32_1 = arith.constant 0 : i32
    return %arg0, %c0_i32, %c0_i32_0 : i32, i32, i32
  }
  func.func @transform_1(%arg0: i32) -> (i32, i32, i32) {
    %c0_i32 = arith.constant 0 : i32
    %c0_i32_0 = arith.constant 0 : i32
    %c0_i32_1 = arith.constant 0 : i32
    %c0_i32_2 = arith.constant 0 : i32
    return %c0_i32, %c0_i32_0, %c0_i32_1 : i32, i32, i32
  }
  func.func @transform_2(%arg0: i32) -> (i32, i32, i32) {
    %c0_i32 = arith.constant 0 : i32
    %c0_i32_0 = arith.constant 0 : i32
    %c0_i32_1 = arith.constant 0 : i32
    return %arg0, %c0_i32, %c0_i32_0 : i32, i32, i32
  }
  func.func @transform_3(%arg0: i32) -> (i32, i32, i32) {
    %c0_i32 = arith.constant 0 : i32
    %c0_i32_0 = arith.constant 0 : i32
    %c0_i32_1 = arith.constant 0 : i32
    return %arg0, %c0_i32, %c0_i32_0 : i32, i32, i32
  }
  func.func @transform_4(%arg0: i32) -> (i32, i32, i32) {
    %c0_i32 = arith.constant 0 : i32
    %c0_i32_0 = arith.constant 0 : i32
    %c0_i32_1 = arith.constant 0 : i32
    return %arg0, %c0_i32, %c0_i32_0 : i32, i32, i32
  }
}

</mosaic_0001>

<bundles_post_ra>
// kernel: conv_lstm_cell.1
= control target key start
LH: loop header
LB: loop body
LE: loop exit
PB: predicated region body
PF: predicated region fallthrough
CT: control target
= control target key end

     0   :  { %s1662_s15 = smov 0   ;;  %s1950_s0 = inlined_call_operand.vmem [shape: bf16[2,13,290], index: 0, kind: input, shape index: {}]   ;;  %s1951_s1 = inlined_call_operand.vmem [shape: bf16[9,32,13], index: 1, kind: input, shape index: {}]   ;;  %s1952_s2 = inlined_call_operand.vmem [shape: f32[2,8,256], index: 2, kind: input, shape index: {}]   ;;  %s1953_s3 = inlined_call_operand.vmem [shape: f32[2,8,256], index: 3, kind: output, shape index: {0}]   ;;  %s1954_s4 = inlined_call_operand.vmem [shape: f32[2,8,256], index: 4, kind: output, shape index: {1}]  }
   0x1 LB: > { %s1378_s16 = sadd.s32 4294967295, %s1620_s15   ;;  %p1382_p0 = scmp.ge.s32.totalorder %s1620_s15, 1  ;;  %s1620_s15 = sphi %s1662_s15, %s15_s15  }
   0x2   : > { %p175_p1 = scmp.lt.s32.totalorder %s1620_s15, 3 }
   0x4   : > { %p176_p2 = pnand %p1382_p0, %p175_p1 }
   0x5   : > { %p211_p3 = scmp.lt.s32.totalorder (!%p176_p2), %s1378_s16, 1  ;;  %s1623_s21 = smov (!%p176_p2), 127  }
   0x6   : > { %179 = sbr.rel (%p176_p2) target bundleno = 606 (0x25e), region = 32  ;;  %s1624_s22 = smov (!%p176_p2), 2  }
   0x7   : > { %s1625_s23 = smov (!%p176_p2), 16   ;;  %s1626_s24 = smov (!%p176_p2), 126  }
   0x8   : > { %s1627_s25 = smov (!%p176_p2), 112   ;;  %s1628_s26 = smov (!%p176_p2), 32  }
   0x9   : > { %s1629_s27 = smov (!%p176_p2), 18   ;;  %s1630_s28 = smov (!%p176_p2), 111  }
   0xa   : > { %s1631_s29 = smov (!%p176_p2), 34   ;;  %s1633_s12 = smov (!%p176_p2), 110  }
   0xb   : > { %v234_v0 = vlaneseq  ;;  %s1958_s16 = smov (!%p211_p3, %s1378_s16), 1  ;;  %v1622_v12 = vmov 0   ;;  %vm461_vm6 = vcmask 15360   ;;  %vm580_vm13 = vcmask 130048   ;;  %v1549_v16 = vld [vmem:[%s1951_s1] sm:$0xff] }
   0xc   : > { %s1570_s17 = smul.u32 24, %s1958_s16  ;;  %v1705_v23 = vunpack.c.l.b16 %v1622_v12  ;;  %v1707_v24 = vunpack.c.h.b16 %v1622_v12 }
   0xd   : > { %v235_v1 = vand.u32 127, %v234_v0 }
   0xe   : > { %s1676_s20 = scalar_lea.vmem %s1950_s0, %s1570_s17 }
   0xf   : > { %v236_v2 = vadd.s32 128, %v235_v1  ;;  %v241_v3 = vand.u32 15, %v235_v1  ;;  %v1404_v9 = vld [vmem:[%s1676_s20] sm:$0xf]  ;;  %v1548_v10 = vld [vmem:[%s1676_s20 + $0x8] sm:$0x70] }
  0x10   : > { %v1680_v11 = vor.u32 %v1548_v10, %v1404_v9  ;;  %v1547_v14 = vld [vmem:[%s1676_s20 + $0x4] sm:$0xf]  ;;  %v1406_v15 = vld [vmem:[%s1676_s20 + $0xc] sm:$0x70]  ;;  %v1412_v19 = vld [vmem:[%s1676_s20 + $0x8] sm:$0xf] }
  0x11   : > { %v248_v4 = vand.u32 15, %v236_v2  ;;  %v444_v5 = vadd.s32 1, %v241_v3  ;;  %v263_v7 = vadd.s32 4294967295, %v241_v3  ;;  %v1692_v17 = vor.u32 %v1547_v14, %v1406_v15  ;;  %v1551_v20 = vld [vmem:[%s1676_s20 + $0x10] sm:$0x70]  ;;  %v1716_v33 = vld [vmem:[%s1676_s20] sm:$0xff] }
  0x12   : > { %312 = vrot.lane.b32.xlu1 %v1680_v11, %s1623_s21  ;;  %v1702_v21 = vor.u32 %v1551_v20, %v1412_v19  ;;  %v1710_v31 = vld [vmem:[%s1676_s20 + $0x8] sm:$0xf]  ;;  %v1713_v32 = vld [vmem:[%s1676_s20 + $0x14] sm:$0x7]  ;;  %v1719_v34 = vld [vmem:[%s1676_s20 + $0xc] sm:$0x77] }
  0x13   : > { %v445_v6 = vadd.s32 1, %v248_v4  ;;  %vm448_vm0 = vcmp.lt.s32.totalorder %v444_v5, 16  ;;  %v264_v8 = vadd.s32 4294967295, %v248_v4  ;;  %vm265_vm3 = vcmp.ge.s32.totalorder %v263_v7, 0  ;;  %v1553_v15 = vld [vmem:[%s1951_s1 + $0x18] sm:$0xff]  ;;  %v1552_v20 = vld [vmem:[%s1951_s1 + $0x10] sm:$0xff] }
  0x14   : > { %316 = vrot.lane.b32.xlu2 %v1702_v21, %s1623_s21  ;;  %v1632_v9 = vmov 65535  }
  0x15   : > { %vm449_vm1 = vcmp.lt.s32.totalorder %v445_v6, 16  ;;  %vm266_vm4 = vcmp.ge.s32.totalorder %v264_v8, 0 }
  0x16   : > { %vm456_vm2 = vmpackc.low %vm449_vm1, %vm448_vm0 }
  0x17   : > { %v1682_v13 = vsel %vm456_vm2, 65537, %v1622_v12  ;;  %vm1688_vm5 = vmpackc.low %vm266_vm4, %vm265_vm3  ;;  %vm318_vm4 = vcmask 1039360  }
  0x18   : > { %458 = vrot.lane.b32.xlu0 %v1682_v13, %s1624_s22  ;;  %v1696_v18 = vsel %vm1688_vm5, 65537, %v1622_v12  ;;  %v277_v19 = vsel %vm1688_vm5, %v1719_v34, 0  ;;  %s1929_s22 = sshll.u32 %s1958_s16, 4 }
  0x19   : > { %s225_s30 = scalar_lea.vmem %s1953_s3, %s1929_s22 }
  0x1a   : > { %314 = vrot.lane.b32.xlu1 %v1692_v17, %s1623_s21  ;;  %s1634_s21 = smov 96  }
  0x20   : > { %577 = vrot.lane.b32.xlu0 %v1696_v18, %s1625_s23 }
  0x6e   : > { %v317_v6 = vpop.permute.xlu2 %316 }
  0x84   : > { %v313_v4 = vpop.permute.xlu1 %312 }
  0x8a   : > { %v459_v22 = vpop.permute.xlu0 %458 }
  0x8b   : > { %v460_v25 = vrot.slane %v459_v22, 4 }
  0x8c   : > { %v315_v5 = vpop.permute.xlu1 %314 }
  0x8d   : > { %v462_v26 = vsel %vm461_vm6, %v460_v25, %v459_v22  ;;  %v470_v27 = vunpack.c.l.b16 %v460_v25  ;;  %v471_v28 = vunpack.c.h.b16 %v460_v25  ;;  %v319_v7 = vsel %vm318_vm4, %v313_v4, %v315_v5 }
  0x8e   : > { %v463_v29 = vunpack.c.l.b16 %v462_v26  ;;  %v464_v30 = vunpack.c.h.b16 %v462_v26  ;;  %v320_v8 = vsel %vm318_vm4, %v315_v5, %v317_v6  ;;  %vm328_vm6 = vcmask 1045504  }
  0x8f   : > { %vm474_vm7 = vcmp.ne.s32.totalorder %v470_v27, %v1705_v23  ;;  %vm475_vm8 = vcmp.ne.s32.totalorder %v471_v28, %v1707_v24  ;;  %v330_v10 = vsel %vm328_vm6, 4294967295, %v1632_v9  ;;  %v390_v25 = vunpack.c.l.b16 %v277_v19 }
  0x90   : > { %vm467_vm9 = vcmp.ne.s32.totalorder %v463_v29, %v1705_v23  ;;  %vm468_vm10 = vcmp.ne.s32.totalorder %v464_v30, %v1707_v24  ;;  %vm476_vm11 = vmpackc.low %vm475_vm8, %vm474_vm7  ;;  %vm329_vm7 = vcmask 1046528   ;;  %vm321_vm8 = vcmask 105472  }
  0x91   : > { %vm469_vm12 = vmpackc.low %vm468_vm10, %vm467_vm9  ;;  %v478_v35 = vsel %vm476_vm11, %v1710_v31, 0  ;;  %v480_v36 = vsel %vm476_vm11, %v1713_v32, 0  ;;  %v1743_v12 = vsel %vm329_vm7, %v330_v10, 0  ;;  %v391_v27 = vunpack.c.h.b16 %v277_v19  ;;  %v1556_v10 = vld [vmem:[%s1951_s1 + $0x30] sm:$0xff] }
  0x92   : > { %v477_v37 = vsel %vm469_vm12, %v1716_v33, 0  ;;  %v479_v38 = vsel %vm469_vm12, %v1719_v34, 0  ;;  %v578_v39 = vpop.permute.xlu0 %577  ;;  %v502_v40 = vunpack.c.l.b16 %v478_v35  ;;  %v505_v41 = vunpack.c.l.b16 %v480_v36 }
  0x93   : > { %v579_v42 = vrot.slane %v578_v39, 4  ;;  %v501_v43 = vunpack.c.h.b16 %v477_v37  ;;  %v504_v44 = vunpack.c.h.b16 %v479_v38  ;;  %v500_v45 = vunpack.c.l.b16 %v477_v37 }
  0x94   : > { %v508_v46 = vpack.c.b16 %v505_v41, %v502_v40  ;;  %v503_v47 = vunpack.c.l.b16 %v479_v38  ;;  %v336_v14 = vand.u32 %v1743_v12, %v320_v8  ;;  %v1550_v38 = vld [vmem:[%s1951_s1 + $0x8] sm:$0xff] }
  0x95   : > { %v581_v48 = vsel %vm580_vm13, %v579_v42, %v578_v39  ;;  %v589_v49 = vunpack.c.l.b16 %v579_v42  ;;  %v590_v50 = vunpack.c.h.b16 %v579_v42  ;;  %v507_v51 = vpack.c.b16 %v504_v44, %v501_v43 }
  0x96   : > { %v582_v52 = vunpack.c.l.b16 %v581_v48  ;;  %v583_v53 = vunpack.c.h.b16 %v581_v48  ;;  %513 = vrot.lane.b32.xlu1 %v508_v46, %s1626_s24  ;;  %v506_v54 = vpack.c.b16 %v503_v47, %v500_v45  ;;  %364 = vmatpush.bf16.msra.mxu1 %v336_v14 }
  0x97   : > { %511 = vrot.lane.b32.xlu0 %v507_v51, %s1626_s24  ;;  %vm593_vm14 = vcmp.ne.s32.totalorder %v589_v49, %v1705_v23  ;;  %vm594_vm15 = vcmp.ne.s32.totalorder %v590_v50, %v1707_v24  ;;  %1569 = vmatpush.bf16.msra.mxu3 %v336_v14 }
  0x98   : > { %vm586_vm0 = vcmp.ne.s32.totalorder %v582_v52, %v1705_v23  ;;  %vm587_vm1 = vcmp.ne.s32.totalorder %v583_v53, %v1707_v24  ;;  %509 = vrot.lane.b32.xlu2 %v506_v54, %s1626_s24  ;;  %vm595_vm2 = vmpackc.low %vm594_vm15, %vm593_vm14  ;;  %vm515_vm15 = vcmask 1031168   ;;  %s1635_s24 = smov 95  }
  0x99   : > { %vm588_vm3 = vmpackc.low %vm587_vm1, %vm586_vm0  ;;  %v597_v59 = vsel %vm595_vm2, %v1710_v31, 0  ;;  %v599_v60 = vsel %vm595_vm2, %v1713_v32, 0  ;;  %1416 = vmatmul.msk.bf16.vlgmr.msra.gmra.mxu1 %vm321_vm8, %v1552_v20  ;;  %vm634_vm0 = vcmask 916480   ;;  %vm898_vm1 = vcmask 261120  }
  0x9a   : > { %v596_v55 = vsel %vm588_vm3, %v1716_v33, 0  ;;  %v598_v56 = vsel %vm588_vm3, %v1719_v34, 0  ;;  %v621_v62 = vunpack.c.l.b16 %v597_v59  ;;  %v624_v63 = vunpack.c.l.b16 %v599_v60  ;;  %1417 = vmatmul.msk.bf16.vlgmr.msra.gmra.mxu3 %vm321_vm8, %v1553_v15 }
  0x9b   : > { %v619_v57 = vunpack.c.l.b16 %v596_v55  ;;  %v622_v58 = vunpack.c.l.b16 %v598_v56  ;;  %v620_v0 = vunpack.c.h.b16 %v596_v55  ;;  %v623_v1 = vunpack.c.h.b16 %v598_v56 }
  0x9c   : > { %v627_v2 = vpack.c.b16 %v624_v63, %v621_v62 }
  0x9d   : > { %v625_v61 = vpack.c.b16 %v622_v58, %v619_v57  ;;  %v626_v3 = vpack.c.b16 %v623_v1, %v620_v0  ;;  %v1554_v0 = vld [vmem:[%s1951_s1 + $0x20] sm:$0xff] }
  0x9f   : > { %628 = vrot.lane.b32.xlu1 %v625_v61, %s1627_s25  ;;  %895 = vrot.lane.b32.xlu0 %v1696_v18, %s1628_s26  ;;  %v276_v18 = vsel %vm1688_vm5, %v1716_v33, 0  ;;  %vm780_vm5 = vcmask 146432  }
  0xa0   : > { %777 = vrot.lane.b32.xlu2 %v1682_v13, %s1629_s27  ;;  %v388_v22 = vunpack.c.l.b16 %v276_v18  ;;  %v389_v26 = vunpack.c.h.b16 %v276_v18  ;;  %s1636_s27 = smov 94  }
  0xa2   : > { %v392_v28 = vpack.c.b16 %v390_v25, %v388_v22  ;;  %v393_v29 = vpack.c.b16 %v391_v27, %v389_v26 }
  0xa4   : > { %v401_v30 = vand.u32 %v392_v28, %v1743_v12  ;;  %v404_v35 = vand.u32 %v393_v29, %v1743_v12 }
  0xa6   : > { %432 = vmatpush.bf16.msrb.mxu3 %v404_v35 }
  0xa7   : > { %710 = vrot.lane.b32.xlu1 %v1680_v11, %s1630_s28  ;;  %632 = vrot.lane.b32.xlu0 %v627_v2, %s1627_s25 }
  0xa8   : > { %630 = vrot.lane.b32.xlu2 %v626_v3, %s1627_s25  ;;  %s220_s25 = scalar_lea.vmem %s1952_s2, %s1929_s22 }
  0xaa   : > { %1428 = vmatmul.msk.bf16.vlgmr.msrb.gmra.mxu3 %vm321_vm8, %v1549_v16 }
  0xaf   : > { %1095 = vrot.lane.b32.xlu1 %v1682_v13, %s1631_s29  ;;  %714 = vrot.lane.b32.xlu0 %v1702_v21, %s1630_s28  ;;  %v333_v13 = vand.u32 %v1743_v12, %v319_v7 }
  0xb0   : > { %712 = vrot.lane.b32.xlu2 %v1692_v17, %s1630_s28 }
  0xb1   : > { %345 = vmatpush.bf16.msra.mxu0 %v333_v13  ;;  %1568 = vmatpush.bf16.msra.mxu2 %v333_v13 }
  0xb4   : > { %1415 = vmatmul.msk.bf16.vlgmr.msra.gmra.mxu2 %vm321_vm8, %v1553_v15  ;;  %1414 = vmatmul.msk.bf16.vlgmr.msra.gmra.mxu0 %vm321_vm8, %v1552_v20 }
  0xb5   : > { %413 = vmatpush.bf16.msrb.mxu2 %v401_v30 }
  0xba   : > { %1429 = vmatmul.msk.bf16.gmra.mxu3 %vm321_vm8, %v1550_v38 }
  0xc4   : > { %1426 = vmatmul.msk.bf16.vlgmr.msrb.gmra.mxu2 %vm321_vm8, %v1549_v16 }
  0xd4   : > { %1427 = vmatmul.msk.bf16.gmra.mxu2 %vm321_vm8, %v1550_v38 }
  0xf2   : > { %v510_v36 = vpop.permute.xlu2 %509 }
  0xfa   : > { %v778_v37 = vpop.permute.xlu2 %777 }
  0xfb   : > { %v779_v39 = vrot.slane %v778_v37, 4 }
  0xfd   : > { %v781_v40 = vsel %vm780_vm5, %v779_v39, %v778_v37  ;;  %v789_v41 = vunpack.c.l.b16 %v779_v39  ;;  %v790_v42 = vunpack.c.h.b16 %v779_v39 }
  0xfe   : > { %v782_v43 = vunpack.c.l.b16 %v781_v40  ;;  %v783_v44 = vunpack.c.h.b16 %v781_v40 }
  0xff   : > { %vm793_vm9 = vcmp.ne.s32.totalorder %v789_v41, %v1705_v23  ;;  %vm794_vm10 = vcmp.ne.s32.totalorder %v790_v42, %v1707_v24  ;;  %v1555_v42 = vld [vmem:[%s1951_s1 + $0x28] sm:$0xff] }
 0x100   : > { %vm786_vm11 = vcmp.ne.s32.totalorder %v782_v43, %v1705_v23  ;;  %vm787_vm12 = vcmp.ne.s32.totalorder %v783_v44, %v1707_v24  ;;  %vm795_vm13 = vmpackc.low %vm794_vm10, %vm793_vm9  ;;  %vm716_vm9 = vcmask 908288   ;;  %vm1098_vm10 = vcmask 277504  }
 0x101   : > { %vm788_vm14 = vmpackc.low %vm787_vm12, %vm786_vm11  ;;  %v797_v45 = vsel %vm795_vm13, %v1710_v31, 0  ;;  %v799_v46 = vsel %vm795_vm13, %v1713_v32, 0 }
 0x102   : > { %v796_v47 = vsel %vm788_vm14, %v1716_v33, 0  ;;  %v798_v48 = vsel %vm788_vm14, %v1719_v34, 0  ;;  %v821_v49 = vunpack.c.l.b16 %v797_v45  ;;  %v824_v50 = vunpack.c.l.b16 %v799_v46  ;;  %v631_v1 = vpop.permute.xlu2 %630 }
 0x103   : > { %v820_v51 = vunpack.c.h.b16 %v796_v47  ;;  %v823_v52 = vunpack.c.h.b16 %v798_v48  ;;  %v819_v53 = vunpack.c.l.b16 %v796_v47  ;;  %v822_v54 = vunpack.c.l.b16 %v798_v48 }
 0x104   : > { %v827_v55 = vpack.c.b16 %v824_v50, %v821_v49 }
 0x105   : > { %v826_v56 = vpack.c.b16 %v823_v52, %v820_v51  ;;  %v825_v57 = vpack.c.b16 %v822_v54, %v819_v53  ;;  %v1557_v52 = vld [vmem:[%s1951_s1 + $0x38] sm:$0xff] }
 0x106   : > { %832 = vrot.lane.b32.xlu1 %v827_v55, %s1633_s12 }
 0x107   : > { %830 = vrot.lane.b32.xlu0 %v826_v56, %s1633_s12  ;;  %828 = vrot.lane.b32.xlu2 %v825_v57, %s1633_s12 }
 0x108   : > { %v514_v58 = vpop.permute.xlu1 %513 }
 0x109   : > { %v512_v59 = vpop.permute.xlu0 %511 }
 0x10a   : > { %v516_v60 = vsel %vm515_vm15, %v510_v36, %v512_v59  ;;  %v517_v61 = vsel %vm515_vm15, %v512_v59, %v514_v58  ;;  %v713_v19 = vpop.permute.xlu2 %712 }
 0x10b   : > { %v525_v62 = vand.u32 %v516_v60, %v1743_v12  ;;  %v528_v63 = vand.u32 %v517_v61, %v1743_v12 }
 0x10d   : > { %537 = vmatpush.bf16.msrb.mxu0 %v525_v62  ;;  %556 = vmatpush.bf16.msrb.mxu1 %v528_v63 }
 0x110   : > { %1442 = vmatmul.msk.bf16.vlgmr.msrb.gmra.mxu0 %vm321_vm8, %v1554_v0  ;;  %1444 = vmatmul.msk.bf16.vlgmr.msrb.gmra.mxu1 %vm321_vm8, %v1554_v0 }
 0x111   : > { %v629_v2 = vpop.permute.xlu1 %628  ;;  %v896_v3 = vpop.permute.xlu0 %895 }
 0x112   : > { %v635_v4 = vsel %vm634_vm0, %v629_v2, %v631_v1  ;;  %v897_v5 = vrot.slane %v896_v3, 4 }
 0x113   : > { %v644_v6 = vand.u32 %v635_v4, %v1743_v12 }
 0x114   : > { %v899_v7 = vsel %vm898_vm1, %v897_v5, %v896_v3  ;;  %v907_v8 = vunpack.c.l.b16 %v897_v5  ;;  %v908_v9 = vunpack.c.h.b16 %v897_v5  ;;  %vm834_vm1 = vcmask 900096  }
 0x115   : > { %v900_v14 = vunpack.c.l.b16 %v899_v7  ;;  %v901_v13 = vunpack.c.h.b16 %v899_v7  ;;  %656 = vmatpush.bf16.msra.mxu2 %v644_v6 }
 0x116   : > { %vm911_vm2 = vcmp.ne.s32.totalorder %v907_v8, %v1705_v23  ;;  %vm912_vm3 = vcmp.ne.s32.totalorder %v908_v9, %v1707_v24  ;;  %v366_v7 = vpop.f32.mrf.mxu1 }
 0x117   : > { %vm904_vm4 = vcmp.ne.s32.totalorder %v900_v14, %v1705_v23  ;;  %vm905_vm6 = vcmp.ne.s32.totalorder %v901_v13, %v1707_v24  ;;  %vm913_vm7 = vmpackc.low %vm912_vm3, %vm911_vm2  ;;  %v1560_v13 = vld [vmem:[%s1951_s1 + $0x50] sm:$0xff]  ;;  %vm952_vm2 = vcmask 785408   ;;  %vm1034_vm3 = vcmask 777216  }
 0x118   : > { %vm906_vm5 = vmpackc.low %vm905_vm6, %vm904_vm4  ;;  %v915_v15 = vsel %vm913_vm7, %v1710_v31, 0  ;;  %v917_v18 = vsel %vm913_vm7, %v1713_v32, 0  ;;  %1458 = vmatmul.msk.bf16.vlgmr.msra.gmra.mxu2 %vm321_vm8, %v1556_v10  ;;  %vm1152_vm4 = vcmask 769024  }
 0x119   : > { %v914_v20 = vsel %vm906_vm5, %v1716_v33, 0  ;;  %v916_v22 = vsel %vm906_vm5, %v1719_v34, 0  ;;  %v711_v25 = vpop.permute.xlu1 %710  ;;  %v633_v26 = vpop.permute.xlu0 %632  ;;  %v939_v27 = vunpack.c.l.b16 %v915_v15  ;;  %v942_v28 = vunpack.c.l.b16 %v917_v18 }
 0x11a   : > { %v636_v29 = vsel %vm634_vm0, %v631_v1, %v633_v26  ;;  %v938_v30 = vunpack.c.h.b16 %v914_v20  ;;  %v941_v35 = vunpack.c.h.b16 %v916_v22  ;;  %v937_v16 = vunpack.c.l.b16 %v914_v20  ;;  %v1561_v26 = vld [vmem:[%s1951_s1 + $0x58] sm:$0xff] }
 0x11b   : > { %v647_v36 = vand.u32 %v636_v29, %v1743_v12  ;;  %v945_v37 = vpack.c.b16 %v942_v28, %v939_v27  ;;  %v940_v38 = vunpack.c.l.b16 %v916_v22  ;;  %v717_v39 = vsel %vm716_vm9, %v711_v25, %v713_v19 }
 0x11c   : > { %v944_v40 = vpack.c.b16 %v941_v35, %v938_v30  ;;  %v726_v41 = vand.u32 %v717_v39, %v1743_v12 }
 0x11d   : > { %950 = vrot.lane.b32.xlu1 %v945_v37, %s1634_s21  ;;  %675 = vmatpush.bf16.msra.mxu3 %v647_v36  ;;  %v943_v43 = vpack.c.b16 %v940_v38, %v937_v16 }
 0x11e   : > { %948 = vrot.lane.b32.xlu0 %v944_v40, %s1634_s21  ;;  %738 = vmatpush.bf16.msra.mxu0 %v726_v41  ;;  %v368_v20 = vpop.f32.mrf.mxu1 }
 0x11f   : > { %946 = vrot.lane.b32.xlu2 %v943_v43, %s1634_s21 }
 0x120   : > { %1443 = vmatmul.msk.bf16.gmra.mxu0 %vm321_vm8, %v1555_v42  ;;  %1445 = vmatmul.msk.bf16.gmra.mxu1 %vm321_vm8, %v1555_v42 }
 0x121   : > { %v1096_v44 = vpop.permute.xlu1 %1095  ;;  %1460 = vmatmul.msk.bf16.vlgmr.msra.gmra.mxu3 %vm321_vm8, %v1556_v10  ;;  %v715_v45 = vpop.permute.xlu0 %714 }
 0x122   : > { %v1097_v46 = vrot.slane %v1096_v44, 4  ;;  %v718_v47 = vsel %vm716_vm9, %v713_v19, %v715_v45  ;;  %v1562_v45 = vld [vmem:[%s1951_s1 + $0x60] sm:$0xff] }
 0x123   : > { %v729_v48 = vand.u32 %v718_v47, %v1743_v12 }
 0x124   : > { %v1099_v49 = vsel %vm1098_vm10, %v1097_v46, %v1096_v44  ;;  %v1107_v50 = vunpack.c.l.b16 %v1097_v46  ;;  %v1108_v51 = vunpack.c.h.b16 %v1097_v46 }
 0x125   : > { %v1100_v53 = vunpack.c.l.b16 %v1099_v49  ;;  %v1101_v54 = vunpack.c.h.b16 %v1099_v49  ;;  %1032 = vrot.lane.b32.xlu1 %v1702_v21, %s1635_s24  ;;  %757 = vmatpush.bf16.msra.mxu1 %v729_v48 }
 0x126   : > { %1030 = vrot.lane.b32.xlu0 %v1692_v17, %s1635_s24  ;;  %vm1111_vm11 = vcmp.ne.s32.totalorder %v1107_v50, %v1705_v23  ;;  %vm1112_vm12 = vcmp.ne.s32.totalorder %v1108_v51, %v1707_v24 }
 0x127   : > { %vm1104_vm13 = vcmp.ne.s32.totalorder %v1100_v53, %v1705_v23  ;;  %vm1105_vm14 = vcmp.ne.s32.totalorder %v1101_v54, %v1707_v24  ;;  %1028 = vrot.lane.b32.xlu2 %v1680_v11, %s1635_s24  ;;  %vm1113_vm15 = vmpackc.low %vm1112_vm12, %vm1111_vm11 }
 0x128   : > { %vm1106_vm0 = vmpackc.low %vm1105_vm14, %vm1104_vm13  ;;  %v1115_v55 = vsel %vm1113_vm15, %v1710_v31, 0  ;;  %v1117_v56 = vsel %vm1113_vm15, %v1713_v32, 0  ;;  %1459 = vmatmul.msk.bf16.gmra.mxu2 %vm321_vm8, %v1557_v52  ;;  %v1558_v31 = vld [vmem:[%s1951_s1 + $0x40] sm:$0xff]  ;;  %v1559_v32 = vld [vmem:[%s1951_s1 + $0x48] sm:$0xff] }
 0x129   : > { %v1114_v17 = vsel %vm1106_vm0, %v1716_v33, 0  ;;  %v1116_v21 = vsel %vm1106_vm0, %v1719_v34, 0  ;;  %v1139_v57 = vunpack.c.l.b16 %v1115_v55  ;;  %v1142_v58 = vunpack.c.l.b16 %v1117_v56  ;;  %v371_v33 = vpop.f32.mrf.mxu3 }
 0x12a   : > { %v1138_v59 = vunpack.c.h.b16 %v1114_v17  ;;  %v1141_v23 = vunpack.c.h.b16 %v1116_v21  ;;  %v1137_v60 = vunpack.c.l.b16 %v1114_v17  ;;  %v1140_v24 = vunpack.c.l.b16 %v1116_v21 }
 0x12b   : > { %v1145_v61 = vpack.c.b16 %v1142_v58, %v1139_v57 }
 0x12c   : > { %v1144_v11 = vpack.c.b16 %v1141_v23, %v1138_v59  ;;  %v1143_v62 = vpack.c.b16 %v1140_v24, %v1137_v60  ;;  %v1564_v60 = vld [vmem:[%s1951_s1 + $0x70] sm:$0xff] }
 0x12d   : > { %1150 = vrot.lane.b32.xlu1 %v1145_v61, %s1636_s27 }
 0x12e   : > { %1148 = vrot.lane.b32.xlu0 %v1144_v11, %s1636_s27 }
 0x12f   : > { %1146 = vrot.lane.b32.xlu2 %v1143_v62, %s1636_s27  ;;  %s230_s27 = scalar_lea.vmem %s1954_s4, %s1929_s22 }
 0x130   : > { %1474 = vmatmul.msk.bf16.vlgmr.msra.gmra.mxu0 %vm321_vm8, %v1558_v31  ;;  %1476 = vmatmul.msk.bf16.vlgmr.msra.gmra.mxu1 %vm321_vm8, %v1558_v31 }
 0x131   : > { %1461 = vmatmul.msk.bf16.gmra.mxu3 %vm321_vm8, %v1557_v52  ;;  %v373_v63 = vpop.f32.mrf.mxu3  ;;  %v347_v2 = vpop.f32.mrf.mxu0 }
 0x137   : > { %v352_v34 = vpop.f32.mrf.mxu2 }
 0x139   : > { %v434_v3 = vpop.f32.mrf.mxu3  ;;  %v349_v19 = vpop.f32.mrf.mxu0 }
 0x13a   : > { %v435_v25 = vadd.f32 %v434_v3, %v366_v7 }
 0x13f   : > { %v354_v0 = vpop.f32.mrf.mxu2 }
 0x140   : > { %1475 = vmatmul.msk.bf16.gmra.mxu0 %vm321_vm8, %v1559_v32  ;;  %1477 = vmatmul.msk.bf16.gmra.mxu1 %vm321_vm8, %v1559_v32 }
 0x141   : > { %v436_v18 = vpop.f32.mrf.mxu3 }
 0x142   : > { %v437_v40 = vadd.f32 %v436_v18, %v368_v20  ;;  %v1567_v20 = vld [vmem:[%s1951_s1 + $0x88] sm:$0xff] }
 0x147   : > { %v415_v5 = vpop.f32.mrf.mxu2 }
 0x148   : > { %v416_v22 = vadd.f32 %v415_v5, %v347_v2  ;;  %v1563_v2 = vld [vmem:[%s1951_s1 + $0x68] sm:$0xff] }
 0x149   : > { %v439_v28 = vpop.f32.mrf.mxu3 }
 0x14a   : > { %v440_v54 = vadd.f32 %v439_v28, %v371_v33 }
 0x14f   : > { %v417_v15 = vpop.f32.mrf.mxu2 }
 0x150   : > { %v418_v39 = vadd.f32 %v417_v15, %v349_v19  ;;  %v1566_v19 = vld [vmem:[%s1951_s1 + $0x80] sm:$0xff] }
 0x151   : > { %v441_v56 = vpop.f32.mrf.mxu3 }
 0x152   : > { %v442_v21 = vadd.f32 %v441_v56, %v373_v63 }
 0x157   : > { %v420_v27 = vpop.f32.mrf.mxu2 }
 0x158   : > { %v421_v53 = vadd.f32 %v420_v27, %v352_v34 }
 0x15f   : > { %v422_v51 = vpop.f32.mrf.mxu2 }
 0x160   : > { %v423_v55 = vadd.f32 %v422_v51, %v354_v0 }
 0x161   : > { %v829_v1 = vpop.permute.xlu2 %828 }
 0x178   : > { %v833_v4 = vpop.permute.xlu1 %832 }
 0x179   : > { %v831_v6 = vpop.permute.xlu0 %830  ;;  %v947_v35 = vpop.permute.xlu2 %946 }
 0x17a   : > { %v835_v8 = vsel %vm834_vm1, %v829_v1, %v831_v6  ;;  %v836_v9 = vsel %vm834_vm1, %v831_v6, %v833_v4 }
 0x17b   : > { %v844_v10 = vand.u32 %v835_v8, %v1743_v12  ;;  %v847_v14 = vand.u32 %v836_v9, %v1743_v12 }
 0x17d   : > { %856 = vmatpush.bf16.msrb.mxu2 %v844_v10  ;;  %875 = vmatpush.bf16.msrb.mxu3 %v847_v14  ;;  %v1565_v10 = vld [vmem:[%s1951_s1 + $0x78] sm:$0xff] }
 0x180   : > { %1490 = vmatmul.msk.bf16.vlgmr.msrb.gmra.mxu2 %vm321_vm8, %v1560_v13  ;;  %1492 = vmatmul.msk.bf16.vlgmr.msrb.gmra.mxu3 %vm321_vm8, %v1560_v13 }
 0x181   : > { %v1029_v48 = vpop.permute.xlu2 %1028 }
 0x189   : > { %v1147_v32 = vpop.permute.xlu2 %1146 }
 0x18d   : > { %v539_v29 = vpop.f32.mrf.mxu0  ;;  %v558_v30 = vpop.f32.mrf.mxu1 }
 0x18e   : > { %v1852_v16 = vadd.f32 %v539_v29, %v416_v22  ;;  %v1854_v36 = vadd.f32 %v558_v30, %v435_v25 }
 0x18f   : > { %v951_v37 = vpop.permute.xlu1 %950 }
 0x190   : > { %1491 = vmatmul.msk.bf16.gmra.mxu2 %vm321_vm8, %v1561_v26  ;;  %1493 = vmatmul.msk.bf16.gmra.mxu3 %vm321_vm8, %v1561_v26  ;;  %v949_v38 = vpop.permute.xlu0 %948 }
 0x191   : > { %v953_v41 = vsel %vm952_vm2, %v947_v35, %v949_v38  ;;  %v954_v42 = vsel %vm952_vm2, %v949_v38, %v951_v37 }
 0x192   : > { %v962_v43 = vand.u32 %v953_v41, %v1743_v12  ;;  %v965_v44 = vand.u32 %v954_v42, %v1743_v12 }
 0x194   : > { %974 = vmatpush.bf16.msrb.mxu0 %v962_v43  ;;  %993 = vmatpush.bf16.msrb.mxu1 %v965_v44 }
 0x195   : > { %v541_v46 = vpop.f32.mrf.mxu0  ;;  %v560_v47 = vpop.f32.mrf.mxu1 }
 0x196   : > { %v1863_v49 = vadd.f32 %v541_v46, %v418_v39  ;;  %v1865_v50 = vadd.f32 %v560_v47, %v437_v40 }
 0x197   : > { %1506 = vmatmul.msk.bf16.vlgmr.msrb.gmra.mxu0 %vm321_vm8, %v1562_v45  ;;  %1508 = vmatmul.msk.bf16.vlgmr.msrb.gmra.mxu1 %vm321_vm8, %v1562_v45  ;;  %v1033_v52 = vpop.permute.xlu1 %1032 }
 0x198   : > { %v1031_v17 = vpop.permute.xlu0 %1030 }
 0x199   : > { %v1035_v57 = vsel %vm1034_vm3, %v1029_v48, %v1031_v17  ;;  %v1036_v58 = vsel %vm1034_vm3, %v1031_v17, %v1033_v52 }
 0x19a   : > { %v1044_v59 = vand.u32 %v1035_v57, %v1743_v12  ;;  %v1047_v23 = vand.u32 %v1036_v58, %v1743_v12 }
 0x19b   : > { %v658_v7 = vpop.f32.mrf.mxu2 }
 0x19c   : > { %1056 = vmatpush.bf16.msra.mxu2 %v1044_v59  ;;  %1075 = vmatpush.bf16.msra.mxu3 %v1047_v23 }
 0x19d   : > { %v544_v24 = vpop.f32.mrf.mxu0  ;;  %v563_v61 = vpop.f32.mrf.mxu1 }
 0x19e   : > { %v1874_v11 = vadd.f32 %v544_v24, %v421_v53  ;;  %v1876_v62 = vadd.f32 %v563_v61, %v440_v54 }
 0x19f   : > { %v1151_v31 = vpop.permute.xlu1 %1150 }
 0x1a0   : > { %1522 = vmatmul.msk.bf16.vlgmr.msra.gmra.mxu2 %vm321_vm8, %v1564_v60  ;;  %1524 = vmatmul.msk.bf16.vlgmr.msra.gmra.mxu3 %vm321_vm8, %v1564_v60  ;;  %v1149_v33 = vpop.permute.xlu0 %1148 }
 0x1a1   : > { %v1153_v34 = vsel %vm1152_vm4, %v1147_v32, %v1149_v33  ;;  %v1154_v63 = vsel %vm1152_vm4, %v1149_v33, %v1151_v31 }
 0x1a2   : > { %v1162_v0 = vand.u32 %v1153_v34, %v1743_v12  ;;  %v1165_v1 = vand.u32 %v1154_v63, %v1743_v12  ;;  %v687_v12 = vadd.f32 %v658_v7, %v1852_v16 }
 0x1a3   : > { %v660_v22 = vpop.f32.mrf.mxu2 }
 0x1a4   : > { %1174 = vmatpush.bf16.msra.mxu0 %v1162_v0  ;;  %1193 = vmatpush.bf16.msra.mxu1 %v1165_v1  ;;  %v677_v8 = vpop.f32.mrf.mxu3  ;;  %v689_v57 = vadd.f32 %v660_v22, %v1863_v49 }
 0x1a5   : > { %v546_v3 = vpop.f32.mrf.mxu0  ;;  %v565_v4 = vpop.f32.mrf.mxu1  ;;  %v688_v9 = vadd.f32 %v677_v8, %v1854_v36 }
 0x1a6   : > { %v1885_v5 = vadd.f32 %v546_v3, %v423_v55  ;;  %v1887_v6 = vadd.f32 %v565_v4, %v442_v21 }
 0x1a7   : > { %1507 = vmatmul.msk.bf16.gmra.mxu0 %vm321_vm8, %v1563_v2  ;;  %1509 = vmatmul.msk.bf16.gmra.mxu1 %vm321_vm8, %v1563_v2 }
 0x1ab   : > { %v663_v26 = vpop.f32.mrf.mxu2 }
 0x1ac   : > { %v679_v25 = vpop.f32.mrf.mxu3  ;;  %v691_v3 = vadd.f32 %v663_v26, %v1874_v11 }
 0x1ad   : > { %v740_v14 = vpop.f32.mrf.mxu0  ;;  %v759_v13 = vpop.f32.mrf.mxu1  ;;  %v690_v58 = vadd.f32 %v679_v25, %v1865_v50 }
 0x1ae   : > { %v769_v15 = vadd.f32 %v740_v14, %v687_v12  ;;  %v770_v18 = vadd.f32 %v759_v13, %v688_v9 }
 0x1b0   : > { %1523 = vmatmul.msk.bf16.gmra.mxu2 %vm321_vm8, %v1565_v10  ;;  %1525 = vmatmul.msk.bf16.gmra.mxu3 %vm321_vm8, %v1565_v10 }
 0x1b3   : > { %v665_v30 = vpop.f32.mrf.mxu2 }
 0x1b4   : > { %v682_v27 = vpop.f32.mrf.mxu3 }
 0x1b5   : > { %v742_v28 = vpop.f32.mrf.mxu0  ;;  %v761_v29 = vpop.f32.mrf.mxu1  ;;  %v692_v49 = vadd.f32 %v682_v27, %v1876_v62  ;;  %v693_v62 = vadd.f32 %v665_v30, %v1885_v5 }
 0x1b6   : > { %v771_v32 = vadd.f32 %v742_v28, %v689_v57  ;;  %v772_v33 = vadd.f32 %v761_v29, %v690_v58 }
 0x1b7   : > { %1538 = vmatmul.msk.bf16.vlgmr.msra.gmra.mxu0 %vm321_vm8, %v1566_v19  ;;  %1540 = vmatmul.msk.bf16.vlgmr.msra.gmra.mxu1 %vm321_vm8, %v1566_v19 }
 0x1bc   : > { %v684_v35 = vpop.f32.mrf.mxu3 }
 0x1bd   : > { %v745_v16 = vpop.f32.mrf.mxu0  ;;  %v764_v36 = vpop.f32.mrf.mxu1  ;;  %v694_v27 = vadd.f32 %v684_v35, %v1887_v6 }
 0x1be   : > { %v773_v14 = vadd.f32 %v745_v16, %v691_v3 }
 0x1c5   : > { %v1908_v41 = vpop.f32.mrf.mxu0  ;;  %v1910_v42 = vpop.f32.mrf.mxu1 }
 0x1c7   : > { %1539 = vmatmul.msk.bf16.gmra.mxu0 %vm321_vm8, %v1567_v20  ;;  %1541 = vmatmul.msk.bf16.gmra.mxu1 %vm321_vm8, %v1567_v20 }
 0x203   : > { %v858_v37 = vpop.f32.mrf.mxu2  ;;  %v877_v38 = vpop.f32.mrf.mxu3 }
 0x204   : > { %v887_v59 = vadd.f32 %v858_v37, %v769_v15  ;;  %v888_v24 = vadd.f32 %v877_v38, %v770_v18  ;;  %v774_v18 = vadd.f32 %v764_v36, %v692_v49 }
 0x20b   : > { %v860_v39 = vpop.f32.mrf.mxu2  ;;  %v879_v40 = vpop.f32.mrf.mxu3 }
 0x20c   : > { %v889_v0 = vadd.f32 %v860_v39, %v771_v32  ;;  %v890_v1 = vadd.f32 %v879_v40, %v772_v33 }
 0x213   : > { %v863_v45 = vpop.f32.mrf.mxu2  ;;  %v882_v46 = vpop.f32.mrf.mxu3 }
 0x214   : > { %v976_v43 = vpop.f32.mrf.mxu0  ;;  %v995_v44 = vpop.f32.mrf.mxu1  ;;  %v891_v11 = vadd.f32 %v863_v45, %v773_v14  ;;  %v892_v26 = vadd.f32 %v882_v46, %v774_v18  ;;  %v776_v45 = vadd.f32 %v1910_v42, %v694_v27 }
 0x215   : > { %v1005_v34 = vadd.f32 %v976_v43, %v887_v59  ;;  %v1006_v63 = vadd.f32 %v995_v44, %v888_v24  ;;  %v775_v44 = vadd.f32 %v1908_v41, %v693_v62 }
 0x21b   : > { %v1912_v51 = vpop.f32.mrf.mxu2  ;;  %v1914_v52 = vpop.f32.mrf.mxu3 }
 0x21c   : > { %v978_v47 = vpop.f32.mrf.mxu0  ;;  %v997_v48 = vpop.f32.mrf.mxu1  ;;  %v893_v35 = vadd.f32 %v1912_v51, %v775_v44 }
 0x21d   : > { %v1007_v7 = vadd.f32 %v978_v47, %v889_v0  ;;  %v1008_v50 = vadd.f32 %v997_v48, %v890_v1  ;;  %v894_v47 = vadd.f32 %v1914_v52, %v776_v45  ;;  %v1262_v52 = vld [vmem:[%s220_s25] sm:$0xff] }
 0x223   : > { %v1058_v55 = vpop.f32.mrf.mxu2  ;;  %v1077_v56 = vpop.f32.mrf.mxu3 }
 0x224   : > { %v981_v53 = vpop.f32.mrf.mxu0  ;;  %v1000_v54 = vpop.f32.mrf.mxu1  ;;  %v1087_v2 = vadd.f32 %v1058_v55, %v1005_v34  ;;  %v1088_v4 = vadd.f32 %v1077_v56, %v1006_v63 }
 0x225   : > { %v1009_v28 = vadd.f32 %v981_v53, %v891_v11  ;;  %v1010_v29 = vadd.f32 %v1000_v54, %v892_v26 }
 0x22b   : > { %v1060_v23 = vpop.f32.mrf.mxu2  ;;  %v1079_v60 = vpop.f32.mrf.mxu3 }
 0x22c   : > { %v1916_v17 = vpop.f32.mrf.mxu0  ;;  %v1918_v21 = vpop.f32.mrf.mxu1  ;;  %v1089_v9 = vadd.f32 %v1060_v23, %v1007_v7  ;;  %v1090_v10 = vadd.f32 %v1079_v60, %v1008_v50  ;;  %v1263_v60 = vld [vmem:[%s220_s25 + $0x8] sm:$0xff] }
 0x22d   : > { %v1011_v41 = vadd.f32 %v1916_v17, %v893_v35  ;;  %v1012_v42 = vadd.f32 %v1918_v21, %v894_v47 }
 0x233   : > { %v1063_v22 = vpop.f32.mrf.mxu2  ;;  %v1082_v25 = vpop.f32.mrf.mxu3 }
 0x234   : > { %v1176_v61 = vpop.f32.mrf.mxu0  ;;  %v1195_v31 = vpop.f32.mrf.mxu1  ;;  %v1091_v37 = vadd.f32 %v1063_v22, %v1009_v28  ;;  %v1092_v36 = vadd.f32 %v1082_v25, %v1010_v29 }
 0x235   : > { %v1205_v8 = vadd.f32 %v1176_v61, %v1087_v2  ;;  %v1206_v12 = vadd.f32 %v1195_v31, %v1088_v4 }
 0x237   : > { %1594 = vtanh.f32 %v1205_v8 }
 0x238   : > { %1596 = vtanh.f32 %v1206_v12 }
 0x23b   : > { %v1065_v54 = vpop.f32.mrf.mxu2  ;;  %v1084_v55 = vpop.f32.mrf.mxu3 }
 0x23c   : > { %v1178_v13 = vpop.f32.mrf.mxu0  ;;  %v1197_v15 = vpop.f32.mrf.mxu1  ;;  %v1093_v51 = vadd.f32 %v1065_v54, %v1011_v41  ;;  %v1094_v58 = vadd.f32 %v1084_v55, %v1012_v42 }
 0x23d   : > { %v1207_v19 = vadd.f32 %v1178_v13, %v1089_v9  ;;  %v1208_v20 = vadd.f32 %v1197_v15, %v1090_v10  ;;  %v1595_v16 = vpop.eup %1594 }
 0x23e   : > { %v1597_v38 = vpop.eup %1596  ;;  %v1238_v53 = vmul.f32 0.5, %v1595_v16 }
 0x23f   : > { %1598 = vtanh.f32 %v1207_v19  ;;  %v1239_v56 = vmul.f32 0.5, %v1597_v38 }
 0x240   : > { %1600 = vtanh.f32 %v1208_v20  ;;  %v1246_v23 = vadd.f32 0.5, %v1238_v53 }
 0x241   : > { %v1247_v32 = vadd.f32 0.5, %v1239_v56 }
 0x244   : > { %v1181_v39 = vpop.f32.mrf.mxu0  ;;  %v1200_v40 = vpop.f32.mrf.mxu1 }
 0x245   : > { %v1599_v43 = vpop.eup %1598  ;;  %v1209_v46 = vadd.f32 %v1181_v39, %v1091_v37  ;;  %v1210_v5 = vadd.f32 %v1200_v40, %v1092_v36 }
 0x246   : > { %v1601_v30 = vpop.eup %1600  ;;  %v1240_v6 = vmul.f32 0.5, %v1599_v43 }
 0x247   : > { %v1241_v48 = vmul.f32 0.5, %v1601_v30  ;;  %1602 = vtanh.f32 %v1209_v46 }
 0x248   : > { %1604 = vtanh.f32 %v1210_v5  ;;  %v1248_v57 = vadd.f32 0.5, %v1240_v6 }
 0x249   : > { %v1249_v59 = vadd.f32 0.5, %v1241_v48 }
 0x24a   : > { %v1264_v0 = vmul.f32 %v1262_v52, %v1248_v57 }
 0x24b   : > { %v1265_v21 = vmul.f32 %v1263_v60, %v1249_v59 }
 0x24c   : > { %v1183_v24 = vpop.f32.mrf.mxu0  ;;  %v1202_v61 = vpop.f32.mrf.mxu1 }
 0x24d   : > { %v1603_v31 = vpop.eup %1602  ;;  %v1211_v33 = vadd.f32 %v1183_v24, %v1093_v51  ;;  %v1212_v34 = vadd.f32 %v1202_v61, %v1094_v58 }
 0x24e   : > { %v1605_v63 = vpop.eup %1604  ;;  %v1266_v17 = vmul.f32 %v1603_v31, %v1246_v23 }
 0x24f   : > { %v1267_v1 = vmul.f32 %v1605_v63, %v1247_v32  ;;  %1606 = vtanh.f32 %v1211_v33 }
 0x250   : > { %v1268_v2 = vadd.f32 %v1266_v17, %v1264_v0  ;;  %1608 = vtanh.f32 %v1212_v34 }
 0x251   : > { %v1269_v3 = vadd.f32 %v1267_v1, %v1265_v21 }
 0x252   : > { %1610 = vtanh.f32 %v1268_v2  ;;  %1274 = vst [vmem:[%s230_s27] sm:$0xff] %v1268_v2 }
 0x253   : > { %1612 = vtanh.f32 %v1269_v3  ;;  %1275 = vst [vmem:[%s230_s27 + $0x8] sm:$0xff] %v1269_v3 }
 0x255   : > { %v1607_v4 = vpop.eup %1606 }
 0x256   : > { %v1609_v49 = vpop.eup %1608  ;;  %v1244_v7 = vmul.f32 0.5, %v1607_v4 }
 0x257   : > { %v1245_v50 = vmul.f32 0.5, %v1609_v49 }
 0x258   : > { %v1611_v8 = vpop.eup %1610  ;;  %v1252_v12 = vadd.f32 0.5, %v1244_v7 }
 0x259   : > { %v1613_v9 = vpop.eup %1612  ;;  %v1253_v10 = vadd.f32 0.5, %v1245_v50 }
 0x25a   : > { %v1272_v14 = vmul.f32 %v1611_v8, %v1252_v12 }
 0x25b   : > { %v1273_v13 = vmul.f32 %v1613_v9, %v1253_v10 }
 0x25c   : > { %1276 = vst [vmem:[%s225_s30] sm:$0xff] %v1272_v14 }
 0x25d   : > { %1277 = vst [vmem:[%s225_s30 + $0x8] sm:$0xff] %v1273_v13 }
 0x25e PF: > { %s15_s15 = sadd.s32 1, %s1620_s15  }
 0x25f   : > { %p12_p4 = scmp.ge.s32.totalorder %s15_s15, 4  }
 0x261   :  { %14 = sbr.rel (!%p12_p4) target bundleno = 1 (0x1), region = 85 }

</bundles_post_ra>
